<compile_context>
chip_gen: v5e
topology: v5e:2x2
jax: 0.10.0
libtpu: 0.0.40
codegen_flags: <defaults>
</compile_context>

<pallas_src>
import jax
import jax.numpy as jnp
from jax.experimental import pallas as pl
from jax.experimental.pallas import tpu as pltpu


def _round_up(x, m):
    return ((x + m - 1) // m) * m


# -----------------------------------------------------------------------------
# Pallas kernel: fused (embedding gather + Linear1) + Linear2 + Linear3,
# all with sigmoid activations, entirely in VMEM.
# -----------------------------------------------------------------------------
def _generator_kernel(ids_ref, w1e_ref, b1_ref, w2_ref, b2_ref, w3_ref, b3_ref,
                      out_ref):
    # ids_ref : [tB, A]      int32   attribute ids for this batch tile
    # w1e_ref : [A, V, Hp]   f32     per-slot folded table: emb @ W1_slot (H padded)
    # b1_ref  : [1, Hp]
    # w2_ref  : [Hp, Hp]
    # b2_ref  : [1, Hp]
    # w3_ref  : [Hp, Up]
    # b3_ref  : [1, Up]
    # out_ref : [tB, Up]
    ids = ids_ref[...]                                   # [tB, A] int32
    tB, A = ids.shape
    V = w1e_ref.shape[1]
    Hp = w1e_ref.shape[2]

    v_iota = jax.lax.broadcasted_iota(jnp.int32, (tB, V), 1)

    # Fused gather + first linear:
    #   h1_pre[b, :] = sum_k emb[ids[b, k]] @ W1[k*D:(k+1)*D, :]
    # expressed as one-hot matmuls (exact: one-hot selects rows) against the
    # pre-folded table w1e[k] = emb @ W1_slot_k.  Unrolled over the 18 slots.
    acc = jnp.zeros((tB, Hp), jnp.float32)
    for k in range(A):
        onehot_k = (ids[:, k:k + 1] == v_iota).astype(jnp.float32)   # [tB, V]
        acc = acc + jnp.dot(onehot_k, w1e_ref[k],
                            preferred_element_type=jnp.float32)
    h1 = jax.nn.sigmoid(acc + b1_ref[...])

    h2 = jax.nn.sigmoid(
        jnp.dot(h1, w2_ref[...], preferred_element_type=jnp.float32)
        + b2_ref[...])
    h3 = jax.nn.sigmoid(
        jnp.dot(h2, w3_ref[...], preferred_element_type=jnp.float32)
        + b3_ref[...])
    out_ref[...] = h3.astype(out_ref.dtype)


def generator_mlp(ids, w1e, b1, w2, b2, w3, b3, *, tile_b=512):
    """Fused Generator forward (gather + 3-layer sigmoid MLP) on TPU.

    ids : [B, A] int32 attribute ids.
    Returns [B_pad, Up] f32 (padded); caller slices the real rows/columns.
    """
    B, A = ids.shape
    _, V, Hp = w1e.shape
    Up = w3.shape[1]

    # Batch: pad to an 8-sublane multiple and tile over a parallel grid.
    B8 = _round_up(B, 8)
    tB = min(B8, tile_b)
    B_pad = _round_up(B, tB)
    if B_pad != B:
        ids = jnp.pad(ids, ((0, B_pad - B), (0, 0)))     # padded rows use id 0
    n_tiles = B_pad // tB

    grid_spec = pltpu.PrefetchScalarGridSpec(
        num_scalar_prefetch=0,
        grid=(n_tiles,),
        in_specs=[
            pl.BlockSpec((tB, A), lambda i: (i, 0)),          # ids (batch-tiled)
            pl.BlockSpec((A, V, Hp), lambda i: (0, 0, 0)),    # folded W1 table
            pl.BlockSpec((1, Hp), lambda i: (0, 0)),          # b1
            pl.BlockSpec((Hp, Hp), lambda i: (0, 0)),         # W2
            pl.BlockSpec((1, Hp), lambda i: (0, 0)),          # b2
            pl.BlockSpec((Hp, Up), lambda i: (0, 0)),         # W3
            pl.BlockSpec((1, Up), lambda i: (0, 0)),          # b3
        ],
        out_specs=pl.BlockSpec((tB, Up), lambda i: (i, 0)),
    )
    return pl.pallas_call(
        _generator_kernel,
        out_shape=jax.ShapeDtypeStruct((B_pad, Up), jnp.float32),
        grid_spec=grid_spec,
        compiler_params=pltpu.CompilerParams(
            dimension_semantics=("parallel",)),
    )(ids, w1e, b1, w2, b2, w3, b3)


# -----------------------------------------------------------------------------
# Generator: parameter construction + forward wrapper
# -----------------------------------------------------------------------------
class Generator:
    def __init__(self, attrs_num, attrs_dim, hidden_dim, user_emb_dim, key):
        self.attrs_num = attrs_num
        self.attrs_dim = attrs_dim
        self.hidden_dim = hidden_dim
        self.user_emb_dim = user_emb_dim

        k_emb, k1, k2, k3, kb1, kb2, kb3 = jax.random.split(key, 7)
        in_dim = attrs_num * attrs_dim
        vocab = 2 * attrs_num

        # "True" parameters (matching nn.Embedding / nn.Linear shapes; linear
        # weights stored as [in, out]).  Used for the pure-JAX reference.
        self.emb = jax.random.normal(k_emb, (vocab, attrs_dim), jnp.float32)
        s1 = 1.0 / jnp.sqrt(in_dim)
        s2 = 1.0 / jnp.sqrt(hidden_dim)
        self.w1 = jax.random.uniform(k1, (in_dim, hidden_dim), jnp.float32, -s1, s1)
        self.b1 = jax.random.uniform(kb1, (1, hidden_dim), jnp.float32, -s1, s1)
        self.w2 = jax.random.uniform(k2, (hidden_dim, hidden_dim), jnp.float32, -s2, s2)
        self.b2 = jax.random.uniform(kb2, (1, hidden_dim), jnp.float32, -s2, s2)
        self.w3 = jax.random.uniform(k3, (hidden_dim, user_emb_dim), jnp.float32, -s2, s2)
        self.b3 = jax.random.uniform(kb3, (1, user_emb_dim), jnp.float32, -s2, s2)

        # Kernel-side parameters: fold emb into W1 per attribute slot and
        # zero-pad every feature dim up to a 128-lane multiple.  Zero padding
        # is exact: padded h1/h2 columns come out as sigmoid(0)=0.5 but the
        # corresponding padded rows of W2/W3 are zero, so they contribute
        # nothing; padded output columns are sliced away outside.
        Hp = _round_up(hidden_dim, 128)
        Up = _round_up(user_emb_dim, 128)
        self._Hp, self._Up = Hp, Up

        w1_3d = self.w1.reshape(attrs_num, attrs_dim, hidden_dim)
        w1e = jnp.einsum('vd,kdh->kvh', self.emb, w1_3d)      # [A, vocab, hidden]
        self._w1e = (jnp.zeros((attrs_num, vocab, Hp), jnp.float32)
                     .at[:, :, :hidden_dim].set(w1e))
        self._b1 = jnp.zeros((1, Hp), jnp.float32).at[:, :hidden_dim].set(self.b1)
        self._w2 = (jnp.zeros((Hp, Hp), jnp.float32)
                    .at[:hidden_dim, :hidden_dim].set(self.w2))
        self._b2 = jnp.zeros((1, Hp), jnp.float32).at[:, :hidden_dim].set(self.b2)
        self._w3 = (jnp.zeros((Hp, Up), jnp.float32)
                    .at[:hidden_dim, :user_emb_dim].set(self.w3))
        self._b3 = jnp.zeros((1, Up), jnp.float32).at[:, :user_emb_dim].set(self.b3)

    def forward(self, attr_id):
        # Mirrors the PyTorch forward: view(-1, 18) of the integer ids.
        ids = attr_id.reshape(-1, 18).astype(jnp.int32)
        B = ids.shape[0]
        out_pad = generator_mlp(ids, self._w1e, self._b1, self._w2, self._b2,
                                self._w3, self._b3)
        return out_pad[:B, :self.user_emb_dim]


# -----------------------------------------------------------------------------
# Reference (pure JAX) for correctness checking — uses the un-folded params.
# -----------------------------------------------------------------------------
def _reference_forward(gen, attr_id):
    ids = attr_id.reshape(-1, 18).astype(jnp.int32)
    feat = jnp.take(gen.emb, ids, axis=0).reshape(
        -1, gen.attrs_num * gen.attrs_dim)
    h1 = jax.nn.sigmoid(feat @ gen.w1 + gen.b1)
    h2 = jax.nn.sigmoid(h1 @ gen.w2 + gen.b2)
    return jax.nn.sigmoid(h2 @ gen.w3 + gen.b3)


if __name__ == "__main__":
    key = jax.random.PRNGKey(0)
    k_params, k_ids = jax.random.split(key)

    attrs_num = 18          # forward hard-codes view(-1, 18)
    attrs_dim = 8
    hidden_dim = 32
    user_emb_dim = 16
    batch = 2

    gen = Generator(attrs_num, attrs_dim, hidden_dim, user_emb_dim, k_params)

    attr_id = jax.random.randint(k_ids, (batch, attrs_num), 0, 2 * attrs_num,
                                 dtype=jnp.int32)

    fake_user = gen.forward(attr_id)
    fake_user = jax.block_until_ready(fake_user)

    ref = _reference_forward(gen, attr_id)
    assert fake_user.shape == (batch, user_emb_dim)
    assert jnp.allclose(fake_user, ref, atol=2e-5, rtol=2e-5)

    print("KERNEL_OK")
</pallas_src>

<mosaic_0001>
module attributes {stable_mosaic.version = 11 : i64} {
  func.func @_generator_kernel(%arg0: i32, %arg1: memref<8x18xi32, #tpu.memory_space<vmem>>, %arg2: memref<18x36x128xf32, #tpu.memory_space<vmem>>, %arg3: memref<1x128xf32, #tpu.memory_space<vmem>>, %arg4: memref<128x128xf32, #tpu.memory_space<vmem>>, %arg5: memref<1x128xf32, #tpu.memory_space<vmem>>, %arg6: memref<128x128xf32, #tpu.memory_space<vmem>>, %arg7: memref<1x128xf32, #tpu.memory_space<vmem>>, %arg8: memref<8x128xf32, #tpu.memory_space<vmem>>) attributes {dimension_semantics = [#tpu.dimension_semantics<parallel>], iteration_bounds = array<i64: 1>, scalar_prefetch = 0 : i64, scratch_operands = 0 : i64, tpu.core_type = #tpu.core_type<tc>, window_params = [{transform_indices = @transform_0, window_bounds = array<i64: 8, 18>}, {pipeline_mode = #tpu.pipeline_mode<synchronous>, transform_indices = @transform_1, window_bounds = array<i64: 18, 36, 128>}, {pipeline_mode = #tpu.pipeline_mode<synchronous>, transform_indices = @transform_2, window_bounds = array<i64: 1, 128>}, {pipeline_mode = #tpu.pipeline_mode<synchronous>, transform_indices = @transform_3, window_bounds = array<i64: 128, 128>}, {pipeline_mode = #tpu.pipeline_mode<synchronous>, transform_indices = @transform_4, window_bounds = array<i64: 1, 128>}, {pipeline_mode = #tpu.pipeline_mode<synchronous>, transform_indices = @transform_5, window_bounds = array<i64: 128, 128>}, {pipeline_mode = #tpu.pipeline_mode<synchronous>, transform_indices = @transform_6, window_bounds = array<i64: 1, 128>}, {transform_indices = @transform_7, window_bounds = array<i64: 8, 128>}]} {
    %c0 = arith.constant 0 : index
    %c0_0 = arith.constant 0 : index
    %0 = vector.load %arg1[%c0, %c0_0] : memref<8x18xi32, #tpu.memory_space<vmem>>, vector<8x18xi32>
    %1 = tpu.iota {dimensions = array<i32: 1>} : vector<8x36xi32>
    %cst = arith.constant 0.000000e+00 : f32
    %2 = vector.broadcast %cst : f32 to vector<8x128xf32>
    %3 = vector.extract_strided_slice %0 {offsets = [0, 0], sizes = [8, 1], strides = [1, 1]} : vector<8x18xi32> to vector<8x1xi32>
    %4 = vector.broadcast %3 : vector<8x1xi32> to vector<8x36xi32>
    %5 = arith.cmpi eq, %4, %1 : vector<8x36xi32>
    %6 = arith.extui %5 : vector<8x36xi1> to vector<8x36xi32>
    %7 = arith.sitofp %6 : vector<8x36xi32> to vector<8x36xf32>
    %c0_1 = arith.constant 0 : index
    %c0_2 = arith.constant 0 : index
    %c0_3 = arith.constant 0 : index
    %8 = vector.load %arg2[%c0_1, %c0_2, %c0_3] : memref<18x36x128xf32, #tpu.memory_space<vmem>>, vector<1x36x128xf32>
    %9 = vector.shape_cast %8 : vector<1x36x128xf32> to vector<36x128xf32>
    %cst_4 = arith.constant dense<0.000000e+00> : vector<8x128xf32>
    %10 = tpu.matmul %7, %9, %cst_4 {dimension_numbers = #tpu.dot_dimension_numbers<[1], [0], [0], [1], [0, 0, 1, 1], [], []>} : vector<8x36xf32>, vector<36x128xf32>, vector<8x128xf32> -> vector<8x128xf32>
    %11 = arith.addf %2, %10 : vector<8x128xf32>
    %12 = vector.extract_strided_slice %0 {offsets = [0, 1], sizes = [8, 1], strides = [1, 1]} : vector<8x18xi32> to vector<8x1xi32>
    %13 = vector.broadcast %12 : vector<8x1xi32> to vector<8x36xi32>
    %14 = arith.cmpi eq, %13, %1 : vector<8x36xi32>
    %15 = arith.extui %14 : vector<8x36xi1> to vector<8x36xi32>
    %16 = arith.sitofp %15 : vector<8x36xi32> to vector<8x36xf32>
    %c1 = arith.constant 1 : index
    %c0_5 = arith.constant 0 : index
    %c0_6 = arith.constant 0 : index
    %17 = vector.load %arg2[%c1, %c0_5, %c0_6] : memref<18x36x128xf32, #tpu.memory_space<vmem>>, vector<1x36x128xf32>
    %18 = vector.shape_cast %17 : vector<1x36x128xf32> to vector<36x128xf32>
    %cst_7 = arith.constant dense<0.000000e+00> : vector<8x128xf32>
    %19 = tpu.matmul %16, %18, %cst_7 {dimension_numbers = #tpu.dot_dimension_numbers<[1], [0], [0], [1], [0, 0, 1, 1], [], []>} : vector<8x36xf32>, vector<36x128xf32>, vector<8x128xf32> -> vector<8x128xf32>
    %20 = arith.addf %11, %19 : vector<8x128xf32>
    %21 = vector.extract_strided_slice %0 {offsets = [0, 2], sizes = [8, 1], strides = [1, 1]} : vector<8x18xi32> to vector<8x1xi32>
    %22 = vector.broadcast %21 : vector<8x1xi32> to vector<8x36xi32>
    %23 = arith.cmpi eq, %22, %1 : vector<8x36xi32>
    %24 = arith.extui %23 : vector<8x36xi1> to vector<8x36xi32>
    %25 = arith.sitofp %24 : vector<8x36xi32> to vector<8x36xf32>
    %c2 = arith.constant 2 : index
    %c0_8 = arith.constant 0 : index
    %c0_9 = arith.constant 0 : index
    %26 = vector.load %arg2[%c2, %c0_8, %c0_9] : memref<18x36x128xf32, #tpu.memory_space<vmem>>, vector<1x36x128xf32>
    %27 = vector.shape_cast %26 : vector<1x36x128xf32> to vector<36x128xf32>
    %cst_10 = arith.constant dense<0.000000e+00> : vector<8x128xf32>
    %28 = tpu.matmul %25, %27, %cst_10 {dimension_numbers = #tpu.dot_dimension_numbers<[1], [0], [0], [1], [0, 0, 1, 1], [], []>} : vector<8x36xf32>, vector<36x128xf32>, vector<8x128xf32> -> vector<8x128xf32>
    %29 = arith.addf %20, %28 : vector<8x128xf32>
    %30 = vector.extract_strided_slice %0 {offsets = [0, 3], sizes = [8, 1], strides = [1, 1]} : vector<8x18xi32> to vector<8x1xi32>
    %31 = vector.broadcast %30 : vector<8x1xi32> to vector<8x36xi32>
    %32 = arith.cmpi eq, %31, %1 : vector<8x36xi32>
    %33 = arith.extui %32 : vector<8x36xi1> to vector<8x36xi32>
    %34 = arith.sitofp %33 : vector<8x36xi32> to vector<8x36xf32>
    %c3 = arith.constant 3 : index
    %c0_11 = arith.constant 0 : index
    %c0_12 = arith.constant 0 : index
    %35 = vector.load %arg2[%c3, %c0_11, %c0_12] : memref<18x36x128xf32, #tpu.memory_space<vmem>>, vector<1x36x128xf32>
    %36 = vector.shape_cast %35 : vector<1x36x128xf32> to vector<36x128xf32>
    %cst_13 = arith.constant dense<0.000000e+00> : vector<8x128xf32>
    %37 = tpu.matmul %34, %36, %cst_13 {dimension_numbers = #tpu.dot_dimension_numbers<[1], [0], [0], [1], [0, 0, 1, 1], [], []>} : vector<8x36xf32>, vector<36x128xf32>, vector<8x128xf32> -> vector<8x128xf32>
    %38 = arith.addf %29, %37 : vector<8x128xf32>
    %39 = vector.extract_strided_slice %0 {offsets = [0, 4], sizes = [8, 1], strides = [1, 1]} : vector<8x18xi32> to vector<8x1xi32>
    %40 = vector.broadcast %39 : vector<8x1xi32> to vector<8x36xi32>
    %41 = arith.cmpi eq, %40, %1 : vector<8x36xi32>
    %42 = arith.extui %41 : vector<8x36xi1> to vector<8x36xi32>
    %43 = arith.sitofp %42 : vector<8x36xi32> to vector<8x36xf32>
    %c4 = arith.constant 4 : index
    %c0_14 = arith.constant 0 : index
    %c0_15 = arith.constant 0 : index
    %44 = vector.load %arg2[%c4, %c0_14, %c0_15] : memref<18x36x128xf32, #tpu.memory_space<vmem>>, vector<1x36x128xf32>
    %45 = vector.shape_cast %44 : vector<1x36x128xf32> to vector<36x128xf32>
    %cst_16 = arith.constant dense<0.000000e+00> : vector<8x128xf32>
    %46 = tpu.matmul %43, %45, %cst_16 {dimension_numbers = #tpu.dot_dimension_numbers<[1], [0], [0], [1], [0, 0, 1, 1], [], []>} : vector<8x36xf32>, vector<36x128xf32>, vector<8x128xf32> -> vector<8x128xf32>
    %47 = arith.addf %38, %46 : vector<8x128xf32>
    %48 = vector.extract_strided_slice %0 {offsets = [0, 5], sizes = [8, 1], strides = [1, 1]} : vector<8x18xi32> to vector<8x1xi32>
    %49 = vector.broadcast %48 : vector<8x1xi32> to vector<8x36xi32>
    %50 = arith.cmpi eq, %49, %1 : vector<8x36xi32>
    %51 = arith.extui %50 : vector<8x36xi1> to vector<8x36xi32>
    %52 = arith.sitofp %51 : vector<8x36xi32> to vector<8x36xf32>
    %c5 = arith.constant 5 : index
    %c0_17 = arith.constant 0 : index
    %c0_18 = arith.constant 0 : index
    %53 = vector.load %arg2[%c5, %c0_17, %c0_18] : memref<18x36x128xf32, #tpu.memory_space<vmem>>, vector<1x36x128xf32>
    %54 = vector.shape_cast %53 : vector<1x36x128xf32> to vector<36x128xf32>
    %cst_19 = arith.constant dense<0.000000e+00> : vector<8x128xf32>
    %55 = tpu.matmul %52, %54, %cst_19 {dimension_numbers = #tpu.dot_dimension_numbers<[1], [0], [0], [1], [0, 0, 1, 1], [], []>} : vector<8x36xf32>, vector<36x128xf32>, vector<8x128xf32> -> vector<8x128xf32>
    %56 = arith.addf %47, %55 : vector<8x128xf32>
    %57 = vector.extract_strided_slice %0 {offsets = [0, 6], sizes = [8, 1], strides = [1, 1]} : vector<8x18xi32> to vector<8x1xi32>
    %58 = vector.broadcast %57 : vector<8x1xi32> to vector<8x36xi32>
    %59 = arith.cmpi eq, %58, %1 : vector<8x36xi32>
    %60 = arith.extui %59 : vector<8x36xi1> to vector<8x36xi32>
    %61 = arith.sitofp %60 : vector<8x36xi32> to vector<8x36xf32>
    %c6 = arith.constant 6 : index
    %c0_20 = arith.constant 0 : index
    %c0_21 = arith.constant 0 : index
    %62 = vector.load %arg2[%c6, %c0_20, %c0_21] : memref<18x36x128xf32, #tpu.memory_space<vmem>>, vector<1x36x128xf32>
    %63 = vector.shape_cast %62 : vector<1x36x128xf32> to vector<36x128xf32>
    %cst_22 = arith.constant dense<0.000000e+00> : vector<8x128xf32>
    %64 = tpu.matmul %61, %63, %cst_22 {dimension_numbers = #tpu.dot_dimension_numbers<[1], [0], [0], [1], [0, 0, 1, 1], [], []>} : vector<8x36xf32>, vector<36x128xf32>, vector<8x128xf32> -> vector<8x128xf32>
    %65 = arith.addf %56, %64 : vector<8x128xf32>
    %66 = vector.extract_strided_slice %0 {offsets = [0, 7], sizes = [8, 1], strides = [1, 1]} : vector<8x18xi32> to vector<8x1xi32>
    %67 = vector.broadcast %66 : vector<8x1xi32> to vector<8x36xi32>
    %68 = arith.cmpi eq, %67, %1 : vector<8x36xi32>
    %69 = arith.extui %68 : vector<8x36xi1> to vector<8x36xi32>
    %70 = arith.sitofp %69 : vector<8x36xi32> to vector<8x36xf32>
    %c7 = arith.constant 7 : index
    %c0_23 = arith.constant 0 : index
    %c0_24 = arith.constant 0 : index
    %71 = vector.load %arg2[%c7, %c0_23, %c0_24] : memref<18x36x128xf32, #tpu.memory_space<vmem>>, vector<1x36x128xf32>
    %72 = vector.shape_cast %71 : vector<1x36x128xf32> to vector<36x128xf32>
    %cst_25 = arith.constant dense<0.000000e+00> : vector<8x128xf32>
    %73 = tpu.matmul %70, %72, %cst_25 {dimension_numbers = #tpu.dot_dimension_numbers<[1], [0], [0], [1], [0, 0, 1, 1], [], []>} : vector<8x36xf32>, vector<36x128xf32>, vector<8x128xf32> -> vector<8x128xf32>
    %74 = arith.addf %65, %73 : vector<8x128xf32>
    %75 = vector.extract_strided_slice %0 {offsets = [0, 8], sizes = [8, 1], strides = [1, 1]} : vector<8x18xi32> to vector<8x1xi32>
    %76 = vector.broadcast %75 : vector<8x1xi32> to vector<8x36xi32>
    %77 = arith.cmpi eq, %76, %1 : vector<8x36xi32>
    %78 = arith.extui %77 : vector<8x36xi1> to vector<8x36xi32>
    %79 = arith.sitofp %78 : vector<8x36xi32> to vector<8x36xf32>
    %c8 = arith.constant 8 : index
    %c0_26 = arith.constant 0 : index
    %c0_27 = arith.constant 0 : index
    %80 = vector.load %arg2[%c8, %c0_26, %c0_27] : memref<18x36x128xf32, #tpu.memory_space<vmem>>, vector<1x36x128xf32>
    %81 = vector.shape_cast %80 : vector<1x36x128xf32> to vector<36x128xf32>
    %cst_28 = arith.constant dense<0.000000e+00> : vector<8x128xf32>
    %82 = tpu.matmul %79, %81, %cst_28 {dimension_numbers = #tpu.dot_dimension_numbers<[1], [0], [0], [1], [0, 0, 1, 1], [], []>} : vector<8x36xf32>, vector<36x128xf32>, vector<8x128xf32> -> vector<8x128xf32>
    %83 = arith.addf %74, %82 : vector<8x128xf32>
    %84 = vector.extract_strided_slice %0 {offsets = [0, 9], sizes = [8, 1], strides = [1, 1]} : vector<8x18xi32> to vector<8x1xi32>
    %85 = vector.broadcast %84 : vector<8x1xi32> to vector<8x36xi32>
    %86 = arith.cmpi eq, %85, %1 : vector<8x36xi32>
    %87 = arith.extui %86 : vector<8x36xi1> to vector<8x36xi32>
    %88 = arith.sitofp %87 : vector<8x36xi32> to vector<8x36xf32>
    %c9 = arith.constant 9 : index
    %c0_29 = arith.constant 0 : index
    %c0_30 = arith.constant 0 : index
    %89 = vector.load %arg2[%c9, %c0_29, %c0_30] : memref<18x36x128xf32, #tpu.memory_space<vmem>>, vector<1x36x128xf32>
    %90 = vector.shape_cast %89 : vector<1x36x128xf32> to vector<36x128xf32>
    %cst_31 = arith.constant dense<0.000000e+00> : vector<8x128xf32>
    %91 = tpu.matmul %88, %90, %cst_31 {dimension_numbers = #tpu.dot_dimension_numbers<[1], [0], [0], [1], [0, 0, 1, 1], [], []>} : vector<8x36xf32>, vector<36x128xf32>, vector<8x128xf32> -> vector<8x128xf32>
    %92 = arith.addf %83, %91 : vector<8x128xf32>
    %93 = vector.extract_strided_slice %0 {offsets = [0, 10], sizes = [8, 1], strides = [1, 1]} : vector<8x18xi32> to vector<8x1xi32>
    %94 = vector.broadcast %93 : vector<8x1xi32> to vector<8x36xi32>
    %95 = arith.cmpi eq, %94, %1 : vector<8x36xi32>
    %96 = arith.extui %95 : vector<8x36xi1> to vector<8x36xi32>
    %97 = arith.sitofp %96 : vector<8x36xi32> to vector<8x36xf32>
    %c10 = arith.constant 10 : index
    %c0_32 = arith.constant 0 : index
    %c0_33 = arith.constant 0 : index
    %98 = vector.load %arg2[%c10, %c0_32, %c0_33] : memref<18x36x128xf32, #tpu.memory_space<vmem>>, vector<1x36x128xf32>
    %99 = vector.shape_cast %98 : vector<1x36x128xf32> to vector<36x128xf32>
    %cst_34 = arith.constant dense<0.000000e+00> : vector<8x128xf32>
    %100 = tpu.matmul %97, %99, %cst_34 {dimension_numbers = #tpu.dot_dimension_numbers<[1], [0], [0], [1], [0, 0, 1, 1], [], []>} : vector<8x36xf32>, vector<36x128xf32>, vector<8x128xf32> -> vector<8x128xf32>
    %101 = arith.addf %92, %100 : vector<8x128xf32>
    %102 = vector.extract_strided_slice %0 {offsets = [0, 11], sizes = [8, 1], strides = [1, 1]} : vector<8x18xi32> to vector<8x1xi32>
    %103 = vector.broadcast %102 : vector<8x1xi32> to vector<8x36xi32>
    %104 = arith.cmpi eq, %103, %1 : vector<8x36xi32>
    %105 = arith.extui %104 : vector<8x36xi1> to vector<8x36xi32>
    %106 = arith.sitofp %105 : vector<8x36xi32> to vector<8x36xf32>
    %c11 = arith.constant 11 : index
    %c0_35 = arith.constant 0 : index
    %c0_36 = arith.constant 0 : index
    %107 = vector.load %arg2[%c11, %c0_35, %c0_36] : memref<18x36x128xf32, #tpu.memory_space<vmem>>, vector<1x36x128xf32>
    %108 = vector.shape_cast %107 : vector<1x36x128xf32> to vector<36x128xf32>
    %cst_37 = arith.constant dense<0.000000e+00> : vector<8x128xf32>
    %109 = tpu.matmul %106, %108, %cst_37 {dimension_numbers = #tpu.dot_dimension_numbers<[1], [0], [0], [1], [0, 0, 1, 1], [], []>} : vector<8x36xf32>, vector<36x128xf32>, vector<8x128xf32> -> vector<8x128xf32>
    %110 = arith.addf %101, %109 : vector<8x128xf32>
    %111 = vector.extract_strided_slice %0 {offsets = [0, 12], sizes = [8, 1], strides = [1, 1]} : vector<8x18xi32> to vector<8x1xi32>
    %112 = vector.broadcast %111 : vector<8x1xi32> to vector<8x36xi32>
    %113 = arith.cmpi eq, %112, %1 : vector<8x36xi32>
    %114 = arith.extui %113 : vector<8x36xi1> to vector<8x36xi32>
    %115 = arith.sitofp %114 : vector<8x36xi32> to vector<8x36xf32>
    %c12 = arith.constant 12 : index
    %c0_38 = arith.constant 0 : index
    %c0_39 = arith.constant 0 : index
    %116 = vector.load %arg2[%c12, %c0_38, %c0_39] : memref<18x36x128xf32, #tpu.memory_space<vmem>>, vector<1x36x128xf32>
    %117 = vector.shape_cast %116 : vector<1x36x128xf32> to vector<36x128xf32>
    %cst_40 = arith.constant dense<0.000000e+00> : vector<8x128xf32>
    %118 = tpu.matmul %115, %117, %cst_40 {dimension_numbers = #tpu.dot_dimension_numbers<[1], [0], [0], [1], [0, 0, 1, 1], [], []>} : vector<8x36xf32>, vector<36x128xf32>, vector<8x128xf32> -> vector<8x128xf32>
    %119 = arith.addf %110, %118 : vector<8x128xf32>
    %120 = vector.extract_strided_slice %0 {offsets = [0, 13], sizes = [8, 1], strides = [1, 1]} : vector<8x18xi32> to vector<8x1xi32>
    %121 = vector.broadcast %120 : vector<8x1xi32> to vector<8x36xi32>
    %122 = arith.cmpi eq, %121, %1 : vector<8x36xi32>
    %123 = arith.extui %122 : vector<8x36xi1> to vector<8x36xi32>
    %124 = arith.sitofp %123 : vector<8x36xi32> to vector<8x36xf32>
    %c13 = arith.constant 13 : index
    %c0_41 = arith.constant 0 : index
    %c0_42 = arith.constant 0 : index
    %125 = vector.load %arg2[%c13, %c0_41, %c0_42] : memref<18x36x128xf32, #tpu.memory_space<vmem>>, vector<1x36x128xf32>
    %126 = vector.shape_cast %125 : vector<1x36x128xf32> to vector<36x128xf32>
    %cst_43 = arith.constant dense<0.000000e+00> : vector<8x128xf32>
    %127 = tpu.matmul %124, %126, %cst_43 {dimension_numbers = #tpu.dot_dimension_numbers<[1], [0], [0], [1], [0, 0, 1, 1], [], []>} : vector<8x36xf32>, vector<36x128xf32>, vector<8x128xf32> -> vector<8x128xf32>
    %128 = arith.addf %119, %127 : vector<8x128xf32>
    %129 = vector.extract_strided_slice %0 {offsets = [0, 14], sizes = [8, 1], strides = [1, 1]} : vector<8x18xi32> to vector<8x1xi32>
    %130 = vector.broadcast %129 : vector<8x1xi32> to vector<8x36xi32>
    %131 = arith.cmpi eq, %130, %1 : vector<8x36xi32>
    %132 = arith.extui %131 : vector<8x36xi1> to vector<8x36xi32>
    %133 = arith.sitofp %132 : vector<8x36xi32> to vector<8x36xf32>
    %c14 = arith.constant 14 : index
    %c0_44 = arith.constant 0 : index
    %c0_45 = arith.constant 0 : index
    %134 = vector.load %arg2[%c14, %c0_44, %c0_45] : memref<18x36x128xf32, #tpu.memory_space<vmem>>, vector<1x36x128xf32>
    %135 = vector.shape_cast %134 : vector<1x36x128xf32> to vector<36x128xf32>
    %cst_46 = arith.constant dense<0.000000e+00> : vector<8x128xf32>
    %136 = tpu.matmul %133, %135, %cst_46 {dimension_numbers = #tpu.dot_dimension_numbers<[1], [0], [0], [1], [0, 0, 1, 1], [], []>} : vector<8x36xf32>, vector<36x128xf32>, vector<8x128xf32> -> vector<8x128xf32>
    %137 = arith.addf %128, %136 : vector<8x128xf32>
    %138 = vector.extract_strided_slice %0 {offsets = [0, 15], sizes = [8, 1], strides = [1, 1]} : vector<8x18xi32> to vector<8x1xi32>
    %139 = vector.broadcast %138 : vector<8x1xi32> to vector<8x36xi32>
    %140 = arith.cmpi eq, %139, %1 : vector<8x36xi32>
    %141 = arith.extui %140 : vector<8x36xi1> to vector<8x36xi32>
    %142 = arith.sitofp %141 : vector<8x36xi32> to vector<8x36xf32>
    %c15 = arith.constant 15 : index
    %c0_47 = arith.constant 0 : index
    %c0_48 = arith.constant 0 : index
    %143 = vector.load %arg2[%c15, %c0_47, %c0_48] : memref<18x36x128xf32, #tpu.memory_space<vmem>>, vector<1x36x128xf32>
    %144 = vector.shape_cast %143 : vector<1x36x128xf32> to vector<36x128xf32>
    %cst_49 = arith.constant dense<0.000000e+00> : vector<8x128xf32>
    %145 = tpu.matmul %142, %144, %cst_49 {dimension_numbers = #tpu.dot_dimension_numbers<[1], [0], [0], [1], [0, 0, 1, 1], [], []>} : vector<8x36xf32>, vector<36x128xf32>, vector<8x128xf32> -> vector<8x128xf32>
    %146 = arith.addf %137, %145 : vector<8x128xf32>
    %147 = vector.extract_strided_slice %0 {offsets = [0, 16], sizes = [8, 1], strides = [1, 1]} : vector<8x18xi32> to vector<8x1xi32>
    %148 = vector.broadcast %147 : vector<8x1xi32> to vector<8x36xi32>
    %149 = arith.cmpi eq, %148, %1 : vector<8x36xi32>
    %150 = arith.extui %149 : vector<8x36xi1> to vector<8x36xi32>
    %151 = arith.sitofp %150 : vector<8x36xi32> to vector<8x36xf32>
    %c16 = arith.constant 16 : index
    %c0_50 = arith.constant 0 : index
    %c0_51 = arith.constant 0 : index
    %152 = vector.load %arg2[%c16, %c0_50, %c0_51] : memref<18x36x128xf32, #tpu.memory_space<vmem>>, vector<1x36x128xf32>
    %153 = vector.shape_cast %152 : vector<1x36x128xf32> to vector<36x128xf32>
    %cst_52 = arith.constant dense<0.000000e+00> : vector<8x128xf32>
    %154 = tpu.matmul %151, %153, %cst_52 {dimension_numbers = #tpu.dot_dimension_numbers<[1], [0], [0], [1], [0, 0, 1, 1], [], []>} : vector<8x36xf32>, vector<36x128xf32>, vector<8x128xf32> -> vector<8x128xf32>
    %155 = arith.addf %146, %154 : vector<8x128xf32>
    %156 = vector.extract_strided_slice %0 {offsets = [0, 17], sizes = [8, 1], strides = [1, 1]} : vector<8x18xi32> to vector<8x1xi32>
    %157 = vector.broadcast %156 : vector<8x1xi32> to vector<8x36xi32>
    %158 = arith.cmpi eq, %157, %1 : vector<8x36xi32>
    %159 = arith.extui %158 : vector<8x36xi1> to vector<8x36xi32>
    %160 = arith.sitofp %159 : vector<8x36xi32> to vector<8x36xf32>
    %c17 = arith.constant 17 : index
    %c0_53 = arith.constant 0 : index
    %c0_54 = arith.constant 0 : index
    %161 = vector.load %arg2[%c17, %c0_53, %c0_54] : memref<18x36x128xf32, #tpu.memory_space<vmem>>, vector<1x36x128xf32>
    %162 = vector.shape_cast %161 : vector<1x36x128xf32> to vector<36x128xf32>
    %cst_55 = arith.constant dense<0.000000e+00> : vector<8x128xf32>
    %163 = tpu.matmul %160, %162, %cst_55 {dimension_numbers = #tpu.dot_dimension_numbers<[1], [0], [0], [1], [0, 0, 1, 1], [], []>} : vector<8x36xf32>, vector<36x128xf32>, vector<8x128xf32> -> vector<8x128xf32>
    %164 = arith.addf %155, %163 : vector<8x128xf32>
    %c0_56 = arith.constant 0 : index
    %c0_57 = arith.constant 0 : index
    %165 = vector.load %arg3[%c0_56, %c0_57] : memref<1x128xf32, #tpu.memory_space<vmem>>, vector<1x128xf32>
    %166 = vector.broadcast %165 : vector<1x128xf32> to vector<8x128xf32>
    %167 = arith.addf %164, %166 : vector<8x128xf32>
    %168 = arith.negf %167 : vector<8x128xf32>
    %169 = math.exp %168 : vector<8x128xf32>
    %cst_58 = arith.constant 1.000000e+00 : f32
    %170 = vector.broadcast %cst_58 : f32 to vector<8x128xf32>
    %171 = arith.addf %170, %169 : vector<8x128xf32>
    %172 = arith.divf %170, %171 : vector<8x128xf32>
    %c0_59 = arith.constant 0 : index
    %c0_60 = arith.constant 0 : index
    %173 = vector.load %arg4[%c0_59, %c0_60] : memref<128x128xf32, #tpu.memory_space<vmem>>, vector<128x128xf32>
    %cst_61 = arith.constant dense<0.000000e+00> : vector<8x128xf32>
    %174 = tpu.matmul %172, %173, %cst_61 {dimension_numbers = #tpu.dot_dimension_numbers<[1], [0], [0], [1], [0, 0, 1, 1], [], []>} : vector<8x128xf32>, vector<128x128xf32>, vector<8x128xf32> -> vector<8x128xf32>
    %c0_62 = arith.constant 0 : index
    %c0_63 = arith.constant 0 : index
    %175 = vector.load %arg5[%c0_62, %c0_63] : memref<1x128xf32, #tpu.memory_space<vmem>>, vector<1x128xf32>
    %176 = vector.broadcast %175 : vector<1x128xf32> to vector<8x128xf32>
    %177 = arith.addf %174, %176 : vector<8x128xf32>
    %178 = arith.negf %177 : vector<8x128xf32>
    %179 = math.exp %178 : vector<8x128xf32>
    %cst_64 = arith.constant 1.000000e+00 : f32
    %180 = vector.broadcast %cst_64 : f32 to vector<8x128xf32>
    %181 = arith.addf %180, %179 : vector<8x128xf32>
    %182 = arith.divf %180, %181 : vector<8x128xf32>
    %c0_65 = arith.constant 0 : index
    %c0_66 = arith.constant 0 : index
    %183 = vector.load %arg6[%c0_65, %c0_66] : memref<128x128xf32, #tpu.memory_space<vmem>>, vector<128x128xf32>
    %cst_67 = arith.constant dense<0.000000e+00> : vector<8x128xf32>
    %184 = tpu.matmul %182, %183, %cst_67 {dimension_numbers = #tpu.dot_dimension_numbers<[1], [0], [0], [1], [0, 0, 1, 1], [], []>} : vector<8x128xf32>, vector<128x128xf32>, vector<8x128xf32> -> vector<8x128xf32>
    %c0_68 = arith.constant 0 : index
    %c0_69 = arith.constant 0 : index
    %185 = vector.load %arg7[%c0_68, %c0_69] : memref<1x128xf32, #tpu.memory_space<vmem>>, vector<1x128xf32>
    %186 = vector.broadcast %185 : vector<1x128xf32> to vector<8x128xf32>
    %187 = arith.addf %184, %186 : vector<8x128xf32>
    %188 = arith.negf %187 : vector<8x128xf32>
    %189 = math.exp %188 : vector<8x128xf32>
    %cst_70 = arith.constant 1.000000e+00 : f32
    %190 = vector.broadcast %cst_70 : f32 to vector<8x128xf32>
    %191 = arith.addf %190, %189 : vector<8x128xf32>
    %192 = arith.divf %190, %191 : vector<8x128xf32>
    %c0_71 = arith.constant 0 : index
    %c0_72 = arith.constant 0 : index
    %193 = vector.load %arg8[%c0_71, %c0_72] : memref<8x128xf32, #tpu.memory_space<vmem>>, vector<8x128xf32>
    tpu.vector_store %arg8[%c0_71, %c0_72], %192 {strides = array<i32>} : memref<8x128xf32, #tpu.memory_space<vmem>>, vector<8x128xf32>,
    return
  }
  func.func @transform_0(%arg0: i32) -> (i32, i32) {
    %c0_i32 = arith.constant 0 : i32
    %c0_i32_0 = arith.constant 0 : i32
    return %arg0, %c0_i32 : i32, i32
  }
  func.func @transform_1(%arg0: i32) -> (i32, i32, i32) {
    %c0_i32 = arith.constant 0 : i32
    %c0_i32_0 = arith.constant 0 : i32
    %c0_i32_1 = arith.constant 0 : i32
    %c0_i32_2 = arith.constant 0 : i32
    return %c0_i32, %c0_i32_0, %c0_i32_1 : i32, i32, i32
  }
  func.func @transform_2(%arg0: i32) -> (i32, i32) {
    %c0_i32 = arith.constant 0 : i32
    %c0_i32_0 = arith.constant 0 : i32
    %c0_i32_1 = arith.constant 0 : i32
    return %c0_i32, %c0_i32_0 : i32, i32
  }
  func.func @transform_3(%arg0: i32) -> (i32, i32) {
    %c0_i32 = arith.constant 0 : i32
    %c0_i32_0 = arith.constant 0 : i32
    %c0_i32_1 = arith.constant 0 : i32
    return %c0_i32, %c0_i32_0 : i32, i32
  }
  func.func @transform_4(%arg0: i32) -> (i32, i32) {
    %c0_i32 = arith.constant 0 : i32
    %c0_i32_0 = arith.constant 0 : i32
    %c0_i32_1 = arith.constant 0 : i32
    return %c0_i32, %c0_i32_0 : i32, i32
  }
  func.func @transform_5(%arg0: i32) -> (i32, i32) {
    %c0_i32 = arith.constant 0 : i32
    %c0_i32_0 = arith.constant 0 : i32
    %c0_i32_1 = arith.constant 0 : i32
    return %c0_i32, %c0_i32_0 : i32, i32
  }
  func.func @transform_6(%arg0: i32) -> (i32, i32) {
    %c0_i32 = arith.constant 0 : i32
    %c0_i32_0 = arith.constant 0 : i32
    %c0_i32_1 = arith.constant 0 : i32
    return %c0_i32, %c0_i32_0 : i32, i32
  }
  func.func @transform_7(%arg0: i32) -> (i32, i32) {
    %c0_i32 = arith.constant 0 : i32
    %c0_i32_0 = arith.constant 0 : i32
    return %arg0, %c0_i32 : i32, i32
  }
}

</mosaic_0001>

<bundles_post_ra>
// kernel: tpu_custom_call.1
= control target key start
LH: loop header
LB: loop body
LE: loop exit
PB: predicated region body
PF: predicated region fallthrough
CT: control target
= control target key end

     0   :  { %12 = vsyncpa [#allocation3], 0  ;;  %s1389_s0 = inlined_call_operand.hbm [shape: s32[8,18], index: 0, kind: input, shape index: {}]   ;;  %s1390_s1 = inlined_call_operand.hbm [shape: f32[18,36,128], index: 1, kind: input, shape index: {}]   ;;  %s1391_s2 = inlined_call_operand.vmem [shape: f32[1,128], index: 2, kind: input, shape index: {}]   ;;  %s1392_s3 = inlined_call_operand.hbm [shape: f32[128,128], index: 3, kind: input, shape index: {}]   ;;  %s1393_s4 = inlined_call_operand.vmem [shape: f32[1,128], index: 4, kind: input, shape index: {}]   ;;  %s1394_s5 = inlined_call_operand.hbm [shape: f32[128,128], index: 5, kind: input, shape index: {}]   ;;  %s1395_s6 = inlined_call_operand.vmem [shape: f32[1,128], index: 6, kind: input, shape index: {}]   ;;  %s1396_s7 = inlined_call_operand.hbm [shape: f32[8,128], index: 7, kind: output, shape index: {}]  }
   0x1   :  { %13 = vsyncpa [#allocation6], 0 }
   0x2   :  { %14 = vsyncpa [#allocation9], 0  ;;  %s31_s26 = sshll.u32 %s1390_s1, 4  ;;  %s32_s26 = int_to_ptr.hbm [resolvable:$true] %s31_s26 }
   0x3   :  { %15 = vsyncpa [#allocation4], 0  ;;  %s1199_s27 = smov [#allocation5]   ;;  %s21_s8 = sshll.u32 %s1389_s0, 4  ;;  %s22_s8 = int_to_ptr.hbm [resolvable:$true] %s21_s8 }
   0x4   :  { %s33_s28 = sshll.u32 %s1199_s27, 4  ;;  %s1200_s9 = smov 128   ;;  %s34_s28 = int_to_ptr.vmem [resolvable:$true] %s33_s28 }
   0x5   :  { %s1201_s10 = smov 8   ;;  %s1202_s11 = smov [#allocation2]  }
   0x6   :  { %39 = dma.hbm_to_vmem [thread:$0]  %s32_s26, 11520, %s34_s28, [#allocation6], %s1200_s9, %s1200_s9, %s1201_s10  }
   0x7   :  { %s23_s12 = sshll.u32 %s1202_s11, 4  ;;  %s46_s15 = sshll.u32 %s1392_s3, 4  ;;  %s24_s12 = int_to_ptr.vmem [resolvable:$true] %s23_s12  ;;  %s47_s15 = int_to_ptr.hbm [resolvable:$true] %s46_s15 }
   0x8   :  { %26 = dma.hbm_to_vmem [thread:$0]  %s22_s8, 128, %s24_s12, [#allocation3]  }
   0x9   :  { %s61_s17 = sshll.u32 %s1394_s5, 4  ;;  %s1203_s18 = smov [#allocation7]   ;;  %s62_s17 = int_to_ptr.hbm [resolvable:$true] %s61_s17 }
   0xa   :  { %s48_s19 = sshll.u32 %s1203_s18, 4  ;;  %s1204_s0 = smov [#allocation8]   ;;  %s49_s19 = int_to_ptr.vmem [resolvable:$true] %s48_s19 }
   0xb   :  { %54 = dma.hbm_to_vmem [thread:$0]  %s47_s15, 2048, %s49_s19, [#allocation6], %s1200_s9, %s1200_s9, %s1201_s10  }
   0xc   :  { %s63_s20 = sshll.u32 %s1204_s0, 4  ;;  %s64_s20 = int_to_ptr.vmem [resolvable:$true] %s63_s20 }
   0xd   :  { %69 = dma.hbm_to_vmem [thread:$0]  %s62_s17, 2048, %s64_s20, [#allocation9], %s1200_s9, %s1200_s9, %s1201_s10  }
   0xe   :  { %1191 = dma.done.wait [#allocation3], 128  }
   0xf   :  { %1192 = vsyncadd [#allocation3], 4294967168 }
  0x10   :  { %1193 = dma.done.wait [#allocation6], 13568  }
  0x11   :  { %1194 = vsyncadd [#allocation6], 4294953728 }
  0x12   :  { %1195 = dma.done.wait [#allocation9], 2048  }
  0x13   :  { %1196 = vsyncadd [#allocation9], 4294965248  ;;  %v1205_v0 = vmov 2   ;;  %v1206_v1 = vmov 1   ;;  %v1207_v2 = vmov 6   ;;  %v1277_v3 = vld [vmem:[#allocation2] sm:$0xff]  ;;  %v89_v35 = vlaneseq }
  0x14   :  { %1039 = vset.pattern.permute.xlu1 %v1205_v0  ;;  %1037 = vset.pattern.permute.xlu0 %v1206_v1  ;;  %v1208_v4 = vmov 3   ;;  %v1209_v5 = vmov 0   ;;  %v1210_v6 = vmov 4   ;;  %v1211_v7 = vmov 7   ;;  %v113_v10 = vld [vmem:[#allocation5 + $0x48] sm:$0xf] }
  0x15   :  { %1041 = vset.pattern.permute.xlu2 %v1207_v2  ;;  %169 = vperm.xlu1 %1039, %v1277_v3   ;;  %v1212_v8 = vmov 10   ;;  %v1213_v9 = vmov 5   ;;  %vm118_vm0 = vcmask 1043456   ;;  %v112_v11 = vld [vmem:[#allocation5 + $0x40] sm:$0xff]  ;;  %v1214_v12 = vmov 8   ;;  %v111_v15 = vld [vmem:[#allocation5 + $0x38] sm:$0xff] }
  0x16   :  { %103 = vperm.xlu0 %1037, %v1277_v3   ;;  %325 = vperm.xlu2 %1041, %v1277_v3   ;;  %v1215_v13 = vmov 12   ;;  %v335_v14 = vld [vmem:[#allocation5 + $0x110] sm:$0xf]  ;;  %v1216_v16 = vmov 11   ;;  %v334_v17 = vld [vmem:[#allocation5 + $0x108] sm:$0xff]  ;;  %v333_v19 = vld [vmem:[#allocation5 + $0x100] sm:$0xff] }
  0x17   :  { %956 = vmatpush.msk.msra.mxu0 %vm118_vm0, %v113_v10  ;;  %973 = vmatpush.msk.msra.mxu2 %vm118_vm0, %v335_v14  ;;  %v110_v18 = vld [vmem:[#allocation5 + $0x30] sm:$0xff]  ;;  %v109_v20 = vld [vmem:[#allocation5 + $0x28] sm:$0xff]  ;;  %v1217_v21 = vmov 9   ;;  %v1218_v22 = vmov 17   ;;  %v1219_v23 = vmov 14   ;;  %v1220_v24 = vmov 15  }
  0x18   :  { %v1221_v25 = vmov 13   ;;  %v1222_v26 = vmov 16   ;;  %v101_v27 = vld [vmem:[#allocation5 + $0x20] sm:$0xf]  ;;  %v179_v28 = vld [vmem:[#allocation5 + $0x70] sm:$0xf] }
  0x19   :  { %134 = vmatpush.msra.mxu0 %v112_v11  ;;  %354 = vmatpush.msra.mxu2 %v334_v17  ;;  %v332_v29 = vld [vmem:[#allocation5 + $0xf8] sm:$0xff]  ;;  %v178_v31 = vld [vmem:[#allocation5 + $0x68] sm:$0xff]  ;;  %v331_v32 = vld [vmem:[#allocation5 + $0xf0] sm:$0xff]  ;;  %v1301_v40 = vand.u32 127, %v89_v35  ;;  %v1223_v43 = vmov 0.0   ;;  %vm114_vm2 = vcmask 293888  }
  0x1a   :  { %958 = vmatpush.msk.msra.mxu1 %vm118_vm0, %v101_v27  ;;  %v100_v30 = vld [vmem:[#allocation5 + $0x18] sm:$0xff]  ;;  %v99_v33 = vld [vmem:[#allocation5 + $0x10] sm:$0xff]  ;;  %v177_v34 = vld [vmem:[#allocation5 + $0x60] sm:$0xff]  ;;  %s1224_s23 = smov [#allocation10]  }
  0x1b   :  { %135 = vmatpush.msra.mxu0 %v111_v15  ;;  %355 = vmatpush.msra.mxu2 %v333_v19  ;;  %v98_v36 = vld [vmem:[#allocation5 + $0x8] sm:$0xff]  ;;  %v176_v37 = vld [vmem:[#allocation5 + $0x58] sm:$0xff]  ;;  %v97_v38 = vld [vmem:[#allocation5] sm:$0xff]  ;;  %s940_s24 = sshll.u32 %s1224_s23, 4  ;;  %s941_s24 = int_to_ptr.vmem [resolvable:$true] %s940_s24 }
  0x1c   :  { %160 = vmatpush.msra.mxu1 %v100_v30  ;;  %v175_v39 = vld [vmem:[#allocation5 + $0x50] sm:$0xff]  ;;  %v218_v42 = vld [vmem:[#allocation5 + $0x98] sm:$0xf]  ;;  %v216_v47 = vld [vmem:[#allocation5 + $0x88] sm:$0xff] }
  0x1d   :  { %1040 = vset.pattern.permute.xlu1 %v1208_v4  ;;  %136 = vmatpush.msra.mxu0 %v110_v18  ;;  %v217_v45 = vld [vmem:[#allocation5 + $0x90] sm:$0xff]  ;;  %v374_v46 = vld [vmem:[#allocation5 + $0x138] sm:$0xf]  ;;  %v215_v49 = vld [vmem:[#allocation5 + $0x80] sm:$0xff] }
  0x1e   :  { %1038 = vset.pattern.permute.xlu0 %v1209_v5  ;;  %208 = vperm.xlu1 %1040, %v1277_v3   ;;  %v373_v48 = vld [vmem:[#allocation5 + $0x130] sm:$0xff]  ;;  %v372_v50 = vld [vmem:[#allocation5 + $0x128] sm:$0xff]  ;;  %v214_v51 = vld [vmem:[#allocation5 + $0x78] sm:$0xff] }
  0x1f   :  { %92 = vperm.xlu0 %1038, %v1277_v3   ;;  %1042 = vset.pattern.permute.xlu2 %v1210_v6  ;;  %v371_v52 = vld [vmem:[#allocation5 + $0x120] sm:$0xff]  ;;  %v370_v53 = vld [vmem:[#allocation5 + $0x118] sm:$0xff]  ;;  %v491_v54 = vld [vmem:[#allocation5 + $0x1b0] sm:$0xf] }
  0x20   :  { %247 = vperm.xlu2 %1042, %v1277_v3   ;;  %137 = vmatpush.msra.mxu0 %v109_v20  ;;  %v530_v55 = vld [vmem:[#allocation5 + $0x1d8] sm:$0xf]  ;;  %v490_v56 = vld [vmem:[#allocation5 + $0x1a8] sm:$0xff]  ;;  %v529_v57 = vld [vmem:[#allocation5 + $0x1d0] sm:$0xff] }
  0x21   :  { %356 = vmatpush.msra.mxu2 %v332_v29  ;;  %161 = vmatpush.msra.mxu1 %v99_v33  ;;  %v489_v58 = vld [vmem:[#allocation5 + $0x1a0] sm:$0xff]  ;;  %v528_v59 = vld [vmem:[#allocation5 + $0x1c8] sm:$0xff]  ;;  %v488_v61 = vld [vmem:[#allocation5 + $0x198] sm:$0xff] }
  0x22   :  { %961 = vmatpush.msk.msrb.mxu0 %vm118_vm0, %v179_v28  ;;  %976 = vmatpush.msk.msra.mxu3 %vm118_vm0, %v374_v46  ;;  %v527_v62 = vld [vmem:[#allocation5 + $0x1c0] sm:$0xff]  ;;  %v487_v63 = vld [vmem:[#allocation5 + $0x190] sm:$0xff]  ;;  %v526_v0 = vld [vmem:[#allocation5 + $0x1b8] sm:$0xff] }
  0x23   :  { %357 = vmatpush.msra.mxu2 %v331_v32  ;;  %162 = vmatpush.msra.mxu1 %v98_v36  ;;  %v647_v1 = vld [vmem:[#allocation5 + $0x250] sm:$0xf]  ;;  %v646_v2 = vld [vmem:[#allocation5 + $0x248] sm:$0xff]  ;;  %v257_v5 = vld [vmem:[#allocation5 + $0xc0] sm:$0xf] }
  0x24   :  { %198 = vmatpush.msrb.mxu0 %v178_v31  ;;  %393 = vmatpush.msra.mxu3 %v373_v48  ;;  %v645_v6 = vld [vmem:[#allocation5 + $0x240] sm:$0xff]  ;;  %v255_v10 = vld [vmem:[#allocation5 + $0xb0] sm:$0xff]  ;;  %v644_v11 = vld [vmem:[#allocation5 + $0x238] sm:$0xff] }
  0x25   :  { %163 = vmatpush.msra.mxu1 %v97_v38  ;;  %985 = vmatpush.msk.msrb.mxu2 %vm118_vm0, %v491_v54  ;;  %v296_v18 = vld [vmem:[#allocation5 + $0xe8] sm:$0xf]  ;;  %v413_v19 = vld [vmem:[#allocation5 + $0x160] sm:$0xf]  ;;  %v567_v46 = vld [vmem:[#allocation5 + $0x1f0] sm:$0xff] }
  0x26   :  { %1043 = vset.pattern.permute.xlu1 %v1211_v7  ;;  %199 = vmatpush.msrb.mxu0 %v177_v34  ;;  %v410_v27 = vld [vmem:[#allocation5 + $0x148] sm:$0xff]  ;;  %v409_v33 = vld [vmem:[#allocation5 + $0x140] sm:$0xff] }
  0x27   :  { %1045 = vset.pattern.permute.xlu0 %v1212_v8  ;;  %364 = vperm.xlu1 %1043, %v1277_v3   ;;  %v256_v8 = vld [vmem:[#allocation5 + $0xb8] sm:$0xff]  ;;  %v292_v30 = vld [vmem:[#allocation5 + $0xc8] sm:$0xff]  ;;  %v451_v38 = vld [vmem:[#allocation5 + $0x180] sm:$0xff] }
  0x28   :  { %481 = vperm.xlu0 %1045, %v1277_v3   ;;  %1044 = vset.pattern.permute.xlu2 %v1213_v9  ;;  %v452_v34 = vld [vmem:[#allocation5 + $0x188] sm:$0xf] }
  0x29   :  { %286 = vperm.xlu2 %1044, %v1277_v3   ;;  %200 = vmatpush.msrb.mxu0 %v176_v37  ;;  %v569_v37 = vld [vmem:[#allocation5 + $0x200] sm:$0xf]  ;;  %v448_v54 = vld [vmem:[#allocation5 + $0x168] sm:$0xff] }
  0x2a   :  { %964 = vmatpush.msk.msrb.mxu1 %vm118_vm0, %v218_v42  ;;  %394 = vmatpush.msra.mxu3 %v372_v50  ;;  %v450_v42 = vld [vmem:[#allocation5 + $0x178] sm:$0xff] }
  0x2b   :  { %201 = vmatpush.msrb.mxu0 %v175_v39  ;;  %510 = vmatpush.msrb.mxu2 %v490_v56  ;;  %v686_v39 = vld [vmem:[#allocation5 + $0x278] sm:$0xf]  ;;  %v608_v56 = vld [vmem:[#allocation5 + $0x228] sm:$0xf] }
  0x2c   :  { %237 = vmatpush.msrb.mxu1 %v217_v45  ;;  %395 = vmatpush.msra.mxu3 %v371_v52  ;;  %v683_v52 = vld [vmem:[#allocation5 + $0x260] sm:$0xff] }
  0x2d   :  { %511 = vmatpush.msrb.mxu2 %v489_v58 }
  0x2e   :  { %238 = vmatpush.msrb.mxu1 %v216_v47  ;;  %396 = vmatpush.msra.mxu3 %v370_v53  ;;  %v684_v47 = vld [vmem:[#allocation5 + $0x268] sm:$0xff] }
  0x2f   :  { %1046 = vset.pattern.permute.xlu1 %v1214_v12  ;;  %512 = vmatpush.msrb.mxu2 %v488_v61  ;;  %v254_v12 = vld [vmem:[#allocation5 + $0xa8] sm:$0xff]  ;;  %v565_v61 = vld [vmem:[#allocation5 + $0x1e0] sm:$0xff] }
  0x30   :  { %1050 = vset.pattern.permute.xlu0 %v1215_v13  ;;  %403 = vperm.xlu1 %1046, %v1277_v3   ;;  %v643_v13 = vld [vmem:[#allocation5 + $0x230] sm:$0xff] }
  0x31   :  { %559 = vperm.xlu0 %1050, %v1277_v3   ;;  %1047 = vset.pattern.permute.xlu2 %v1216_v16  ;;  %v253_v16 = vld [vmem:[#allocation5 + $0xa0] sm:$0xff] }
  0x32   :  { %520 = vperm.xlu2 %1047, %v1277_v3   ;;  %239 = vmatpush.msrb.mxu1 %v215_v49  ;;  %v449_v49 = vld [vmem:[#allocation5 + $0x170] sm:$0xff] }
  0x33   :  { %988 = vmatpush.msk.msrb.mxu3 %vm118_vm0, %v530_v55  ;;  %513 = vmatpush.msrb.mxu2 %v487_v63  ;;  %v606_v63 = vld [vmem:[#allocation5 + $0x218] sm:$0xff] }
  0x34   :  { %240 = vmatpush.msrb.mxu1 %v214_v51 }
  0x35   :  { %549 = vmatpush.msrb.mxu3 %v529_v57  ;;  %v566_v57 = vld [vmem:[#allocation5 + $0x1e8] sm:$0xff] }
  0x37   :  { %550 = vmatpush.msrb.mxu3 %v528_v59  ;;  %v682_v59 = vld [vmem:[#allocation5 + $0x258] sm:$0xff] }
  0x38   :  { %1048 = vset.pattern.permute.xlu1 %v1217_v21  ;;  %v295_v21 = vld [vmem:[#allocation5 + $0xe0] sm:$0xff] }
  0x39   :  { %1055 = vset.pattern.permute.xlu0 %v1218_v22  ;;  %442 = vperm.xlu1 %1048, %v1277_v3  }
  0x3a   :  { %1049 = vset.pattern.permute.xlu2 %v1219_v23  ;;  %551 = vmatpush.msrb.mxu3 %v527_v62  ;;  %v294_v23 = vld [vmem:[#allocation5 + $0xd8] sm:$0xff]  ;;  %v725_v62 = vld [vmem:[#allocation5 + $0x2a0] sm:$0xf] }
  0x3b   :  { %637 = vperm.xlu2 %1049, %v1277_v3  }
  0x3c   :  { %552 = vmatpush.msrb.mxu3 %v526_v0  ;;  %v724_v0 = vld [vmem:[#allocation5 + $0x298] sm:$0xff] }
  0x41   :  { %1051 = vset.pattern.permute.xlu1 %v1220_v24  ;;  %v411_v24 = vld [vmem:[#allocation5 + $0x150] sm:$0xff] }
  0x42   :  { %676 = vperm.xlu1 %1051, %v1277_v3  }
  0x43   :  { %1052 = vset.pattern.permute.xlu2 %v1221_v25 }
  0x44   :  { %598 = vperm.xlu2 %1052, %v1277_v3  }
  0x4a   :  { %1053 = vset.pattern.permute.xlu1 %v1222_v26  ;;  %v293_v26 = vld [vmem:[#allocation5 + $0xd0] sm:$0xff] }
  0x4b   :  { %715 = vperm.xlu1 %1053, %v1277_v3  }
  0x4c   :  { %1054 = vset.pattern.permute.xlu2 %v1218_v22  ;;  %v412_v22 = vld [vmem:[#allocation5 + $0x158] sm:$0xff] }
  0x4d   :  { %754 = vperm.xlu2 %1054, %v1277_v3  }
  0x70   :  { %v326_v41 = vpop.permute.xlu2 %325 }
  0x71   :  { %vm327_vm1 = vcmp.eq.s32.totalorder %v326_v41, %v1301_v40  ;;  %v568_v41 = vld [vmem:[#allocation5 + $0x1f8] sm:$0xff] }
  0x72   :  { %v972_v44 = vsel %vm327_vm1, 1.0, %v1223_v43 }
  0x73   :  { %974 = vmatmul.msk.f32.vlgmr.msra.gmra.mxu2 %vm114_vm2, %v972_v44  ;;  %v685_v44 = vld [vmem:[#allocation5 + $0x270] sm:$0xff] }
  0x74   :  { %997 = vmatpush.msk.msra.mxu2 %vm118_vm0, %v647_v1 }
  0x76   :  { %666 = vmatpush.msra.mxu2 %v646_v2  ;;  %v605_v2 = vld [vmem:[#allocation5 + $0x210] sm:$0xff] }
  0x78   :  { %667 = vmatpush.msra.mxu2 %v645_v6 }
  0x7a   :  { %v1310_v60 = vpop.permute.xlu2 %247  ;;  %668 = vmatpush.msra.mxu2 %v644_v11  ;;  %v721_v11 = vld [vmem:[#allocation5 + $0x280] sm:$0xff] }
  0x7b   :  { %vm249_vm6 = vcmp.eq.s32.totalorder %v1310_v60, %v1301_v40  ;;  %v607_v60 = vld [vmem:[#allocation5 + $0x220] sm:$0xff] }
  0x7c   :  { %669 = vmatpush.msra.mxu2 %v643_v13  ;;  %v966_v28 = vsel %vm249_vm6, 1.0, %v1223_v43 }
  0x83   :  { %v1317_v9 = vpop.permute.xlu2 %286 }
  0x84   :  { %vm288_vm11 = vcmp.eq.s32.totalorder %v1317_v9, %v1301_v40  ;;  %v722_v9 = vld [vmem:[#allocation5 + $0x288] sm:$0xff] }
  0x85   :  { %v969_v50 = vsel %vm288_vm11, 1.0, %v1223_v43 }
  0x87   :  { %v170_v3 = vpop.permute.xlu1 %169 }
  0x88   :  { %v104_v4 = vpop.permute.xlu0 %103  ;;  %vm171_vm4 = vcmp.eq.s32.totalorder %v170_v3, %v1301_v40 }
  0x89   :  { %vm105_vm3 = vcmp.eq.s32.totalorder %v104_v4, %v1301_v40  ;;  %v960_v17 = vsel %vm171_vm4, 1.0, %v1223_v43  ;;  %v723_v4 = vld [vmem:[#allocation5 + $0x290] sm:$0xff] }
  0x8a   :  { %v955_v7 = vsel %vm105_vm3, 1.0, %v1223_v43 }
  0x8b   :  { %957 = vmatmul.msk.f32.vlgmr.msra.gmra.mxu0 %vm114_vm2, %v955_v7 }
  0x8c   :  { %967 = vmatpush.msk.msra.mxu0 %vm118_vm0, %v257_v5  ;;  %v521_v25 = vpop.permute.xlu2 %520  ;;  %v604_v5 = vld [vmem:[#allocation5 + $0x208] sm:$0xff] }
  0x8d   :  { %vm522_vm10 = vcmp.eq.s32.totalorder %v521_v25, %v1301_v40 }
  0x8e   :  { %276 = vmatpush.msra.mxu0 %v256_v8  ;;  %v987_v48 = vsel %vm522_vm10, 1.0, %v1223_v43  ;;  %v764_v8 = vld [vmem:[#allocation5 + $0x2c8] sm:$0xf] }
  0x90   :  { %277 = vmatpush.msra.mxu0 %v255_v10  ;;  %v209_v14 = vpop.permute.xlu1 %208  ;;  %v763_v10 = vld [vmem:[#allocation5 + $0x2c0] sm:$0xff] }
  0x91   :  { %v93_v15 = vpop.permute.xlu0 %92  ;;  %vm210_vm7 = vcmp.eq.s32.totalorder %v209_v14, %v1301_v40 }
  0x92   :  { %vm94_vm5 = vcmp.eq.s32.totalorder %v93_v15, %v1301_v40  ;;  %278 = vmatpush.msra.mxu0 %v254_v12  ;;  %v963_v32 = vsel %vm210_vm7, 1.0, %v1223_v43  ;;  %v762_v12 = vld [vmem:[#allocation5 + $0x2b8] sm:$0xff]  ;;  %v761_v15 = vld [vmem:[#allocation5 + $0x2b0] sm:$0xff] }
  0x93   :  { %v954_v20 = vsel %vm94_vm5, 1.0, %v1223_v43  ;;  %962 = vmatmul.msk.f32.vlgmr.msrb.gmra.mxu0 %vm114_vm2, %v960_v17 }
  0x94   :  { %959 = vmatmul.msk.f32.vlgmr.msra.gmra.mxu1 %vm114_vm2, %v954_v20  ;;  %279 = vmatpush.msra.mxu0 %v253_v16 }
  0x95   :  { %970 = vmatpush.msk.msra.mxu1 %vm118_vm0, %v296_v18  ;;  %v638_v45 = vpop.permute.xlu2 %637  ;;  %v760_v18 = vld [vmem:[#allocation5 + $0x2a8] sm:$0xff] }
  0x96   :  { %979 = vmatpush.msk.msrb.mxu0 %vm118_vm0, %v413_v19  ;;  %vm639_vm12 = vcmp.eq.s32.totalorder %v638_v45, %v1301_v40 }
  0x97   :  { %315 = vmatpush.msra.mxu1 %v295_v21  ;;  %v996_v53 = vsel %vm639_vm12, 1.0, %v1223_v43 }
  0x98   :  { %432 = vmatpush.msrb.mxu0 %v412_v22 }
  0x99   :  { %316 = vmatpush.msra.mxu1 %v294_v23  ;;  %v365_v29 = vpop.permute.xlu1 %364 }
  0x9a   :  { %433 = vmatpush.msrb.mxu0 %v411_v24  ;;  %v482_v31 = vpop.permute.xlu0 %481  ;;  %vm366_vm8 = vcmp.eq.s32.totalorder %v365_v29, %v1301_v40 }
  0x9b   :  { %968 = vmatmul.msk.f32.vlgmr.msra.gmra.mxu0 %vm114_vm2, %v966_v28  ;;  %317 = vmatpush.msra.mxu1 %v293_v26  ;;  %vm483_vm9 = vcmp.eq.s32.totalorder %v482_v31, %v1301_v40  ;;  %v975_v35 = vsel %vm366_vm8, 1.0, %v1223_v43 }
  0x9c   :  { %965 = vmatmul.msk.f32.vlgmr.msrb.gmra.mxu1 %vm114_vm2, %v963_v32  ;;  %434 = vmatpush.msrb.mxu0 %v410_v27  ;;  %v984_v36 = vsel %vm483_vm9, 1.0, %v1223_v43  ;;  %v831_v32 = vld [vmem:[#allocation7 + $0x78] sm:$0xff] }
  0x9d   :  { %977 = vmatmul.msk.f32.vlgmr.msra.gmra.mxu3 %vm114_vm2, %v975_v35  ;;  %318 = vmatpush.msra.mxu1 %v292_v30 }
  0x9e   :  { %435 = vmatpush.msrb.mxu0 %v409_v33  ;;  %986 = vmatmul.msk.f32.vlgmr.msrb.gmra.mxu2 %vm114_vm2, %v984_v36  ;;  %v599_v7 = vpop.permute.xlu2 %598 }
  0x9f   :  { %982 = vmatpush.msk.msrb.mxu1 %vm118_vm0, %v452_v34  ;;  %1000 = vmatpush.msk.msra.mxu3 %vm118_vm0, %v686_v39  ;;  %vm600_vm1 = vcmp.eq.s32.totalorder %v599_v7, %v1301_v40  ;;  %v830_v34 = vld [vmem:[#allocation7 + $0x70] sm:$0xff] }
  0xa0   :  { %991 = vmatpush.msk.msra.mxu0 %vm118_vm0, %v569_v37  ;;  %v993_v13 = vsel %vm600_vm1, 1.0, %v1223_v43  ;;  %836 = vmatpush.msrb.mxu2 %v831_v32  ;;  %v882_v32 = vld [vmem:[#allocation8 + $0x38] sm:$0xff] }
  0xa1   :  { %471 = vmatpush.msrb.mxu1 %v451_v38  ;;  %705 = vmatpush.msra.mxu3 %v685_v44  ;;  %v828_v38 = vld [vmem:[#allocation7 + $0x60] sm:$0xff]  ;;  %v826_v44 = vld [vmem:[#allocation7 + $0x50] sm:$0xff] }
  0xa2   :  { %588 = vmatpush.msra.mxu0 %v568_v41  ;;  %v404_v51 = vpop.permute.xlu1 %403  ;;  %837 = vmatpush.msrb.mxu2 %v830_v34  ;;  %v827_v41 = vld [vmem:[#allocation7 + $0x58] sm:$0xff]  ;;  %v879_v34 = vld [vmem:[#allocation8 + $0x20] sm:$0xff] }
  0xa3   :  { %472 = vmatpush.msrb.mxu1 %v450_v42  ;;  %vm405_vm13 = vcmp.eq.s32.totalorder %v404_v51, %v1301_v40  ;;  %706 = vmatpush.msra.mxu3 %v684_v47  ;;  %v560_v58 = vpop.permute.xlu0 %559  ;;  %v825_v47 = vld [vmem:[#allocation7 + $0x48] sm:$0xff] }
  0xa4   :  { %589 = vmatpush.msra.mxu0 %v567_v46  ;;  %971 = vmatmul.msk.f32.vlgmr.msra.gmra.mxu1 %vm114_vm2, %v969_v50  ;;  %v978_v55 = vsel %vm405_vm13, 1.0, %v1223_v43  ;;  %vm561_vm14 = vcmp.eq.s32.totalorder %v560_v58, %v1301_v40  ;;  %v824_v50 = vld [vmem:[#allocation7 + $0x40] sm:$0xff] }
  0xa5   :  { %989 = vmatmul.msk.f32.vlgmr.msrb.gmra.mxu3 %vm114_vm2, %v987_v48  ;;  %473 = vmatpush.msrb.mxu1 %v449_v49  ;;  %v990_v1 = vsel %vm561_vm14, 1.0, %v1223_v43 }
  0xa6   :  { %980 = vmatmul.msk.f32.vlgmr.msrb.gmra.mxu0 %vm114_vm2, %v978_v55  ;;  %707 = vmatpush.msra.mxu3 %v683_v52  ;;  %v822_v55 = vld [vmem:[#allocation7 + $0x30] sm:$0xff] }
  0xa7   :  { %474 = vmatpush.msrb.mxu1 %v448_v54  ;;  %998 = vmatmul.msk.f32.vlgmr.msra.gmra.mxu2 %vm114_vm2, %v996_v53  ;;  %v755_v16 = vpop.permute.xlu2 %754  ;;  %v823_v53 = vld [vmem:[#allocation7 + $0x38] sm:$0xff] }
  0xa8   :  { %590 = vmatpush.msra.mxu0 %v566_v57  ;;  %708 = vmatpush.msra.mxu3 %v682_v59  ;;  %v821_v57 = vld [vmem:[#allocation7 + $0x28] sm:$0xff]  ;;  %v820_v59 = vld [vmem:[#allocation7 + $0x20] sm:$0xff] }
  0xa9   :  { %994 = vmatpush.msk.msra.mxu1 %vm118_vm0, %v608_v56 }
  0xaa   :  { %591 = vmatpush.msra.mxu0 %v565_v61  ;;  %v819_v61 = vld [vmem:[#allocation7 + $0x18] sm:$0xff] }
  0xab   :  { %627 = vmatpush.msra.mxu1 %v607_v60  ;;  %v443_v3 = vpop.permute.xlu1 %442 }
  0xac   :  { %1003 = vmatpush.msk.msrb.mxu0 %vm118_vm0, %v725_v62  ;;  %vm444_vm15 = vcmp.eq.s32.totalorder %v443_v3, %v1301_v40 }
  0xad   :  { %628 = vmatpush.msra.mxu1 %v606_v63  ;;  %v981_v6 = vsel %vm444_vm15, 1.0, %v1223_v43  ;;  %v818_v63 = vld [vmem:[#allocation7 + $0x10] sm:$0xff] }
  0xae   :  { %744 = vmatpush.msrb.mxu0 %v724_v0  ;;  %983 = vmatmul.msk.f32.vlgmr.msrb.gmra.mxu1 %vm114_vm2, %v981_v6 }
  0xaf   :  { %629 = vmatpush.msra.mxu1 %v605_v2  ;;  %992 = vmatmul.msk.f32.vlgmr.msra.gmra.mxu0 %vm114_vm2, %v990_v1  ;;  %v817_v2 = vld [vmem:[#allocation7 + $0x8] sm:$0xff] }
  0xb0   :  { %745 = vmatpush.msrb.mxu0 %v723_v4  ;;  %v816_v4 = vld [vmem:[#allocation7] sm:$0xff] }
  0xb1   :  { %630 = vmatpush.msra.mxu1 %v604_v5 }
  0xb2   :  { %746 = vmatpush.msrb.mxu0 %v722_v9 }
  0xb3   :  { %1006 = vmatpush.msk.msrb.mxu1 %vm118_vm0, %v764_v8  ;;  %vm756_vm0 = vcmp.eq.s32.totalorder %v755_v16, %v1301_v40  ;;  %v1056_v8 = vld [vmem:[%s1391_s2] ss:$0 sm:$0xff] }
  0xb4   :  { %747 = vmatpush.msrb.mxu0 %v721_v11  ;;  %v677_v14 = vpop.permute.xlu1 %676  ;;  %v1005_v19 = vsel %vm756_vm0, 1.0, %v1223_v43 }
  0xb5   :  { %783 = vmatpush.msrb.mxu1 %v763_v10  ;;  %vm678_vm3 = vcmp.eq.s32.totalorder %v677_v14, %v1301_v40 }
  0xb6   :  { %v999_v17 = vsel %vm678_vm3, 1.0, %v1223_v43  ;;  %995 = vmatmul.msk.f32.vlgmr.msra.gmra.mxu1 %vm114_vm2, %v993_v13 }
  0xb7   :  { %784 = vmatpush.msrb.mxu1 %v762_v12  ;;  %1001 = vmatmul.msk.f32.vlgmr.msra.gmra.mxu3 %vm114_vm2, %v999_v17 }
  0xb9   :  { %785 = vmatpush.msrb.mxu1 %v761_v15 }
  0xbb   :  { %786 = vmatpush.msrb.mxu1 %v760_v18 }
  0xbd   :  { %v716_v20 = vpop.permute.xlu1 %715 }
  0xbe   :  { %vm717_vm4 = vcmp.eq.s32.totalorder %v716_v20, %v1301_v40  ;;  %1007 = vmatmul.msk.f32.vlgmr.msrb.gmra.mxu1 %vm114_vm2, %v1005_v19 }
  0xbf   :  { %v1002_v21 = vsel %vm717_vm4, 1.0, %v1223_v43  ;;  %v829_v43 = vld [vmem:[#allocation7 + $0x68] sm:$0xff] }
  0xc0   :  { %1004 = vmatmul.msk.f32.vlgmr.msrb.gmra.mxu0 %vm114_vm2, %v1002_v21  ;;  %838 = vmatpush.msrb.mxu2 %v829_v43  ;;  %v877_v43 = vld [vmem:[#allocation8 + $0x10] sm:$0xff] }
  0xc2   :  { %839 = vmatpush.msrb.mxu2 %v828_v38  ;;  %v1057_v38 = vld [vmem:[%s1393_s4] ss:$0 sm:$0xff] }
  0xc4   :  { %840 = vmatpush.msrb.mxu2 %v827_v41 }
  0xc6   :  { %841 = vmatpush.msrb.mxu2 %v826_v44 }
  0xc8   :  { %842 = vmatpush.msrb.mxu2 %v825_v47 }
  0xca   :  { %843 = vmatpush.msrb.mxu2 %v824_v50 }
  0xcc   :  { %844 = vmatpush.msrb.mxu2 %v823_v53 }
  0xce   :  { %845 = vmatpush.msrb.mxu2 %v822_v55 }
  0xd0   :  { %846 = vmatpush.msrb.mxu2 %v821_v57 }
  0xd2   :  { %847 = vmatpush.msrb.mxu2 %v820_v59 }
  0xd4   :  { %848 = vmatpush.msrb.mxu2 %v819_v61 }
  0xd6   :  { %849 = vmatpush.msrb.mxu2 %v818_v63 }
  0xd8   :  { %850 = vmatpush.msrb.mxu2 %v817_v2 }
  0xda   :  { %851 = vmatpush.msrb.mxu2 %v816_v4 }
  0xf6   :  { %v359_v40 = vpop.f32.mrf.mxu2 }
 0x108   :  { %v139_v22 = vpop.f32.mrf.mxu0 }
 0x110   :  { %v203_v24 = vpop.f32.mrf.mxu0 }
 0x111   :  { %v165_v23 = vpop.f32.mrf.mxu1 }
 0x112   :  { %v166_v25 = vadd.f32 %v165_v23, %v139_v22 }
 0x114   :  { %v206_v27 = vadd.f32 %v203_v24, %v166_v25  ;;  %v890_v24 = vld [vmem:[#allocation8 + $0x78] sm:$0xff]  ;;  %v889_v25 = vld [vmem:[#allocation8 + $0x70] sm:$0xff] }
 0x115   :  { %895 = vmatpush.msrb.mxu3 %v890_v24 }
 0x117   :  { %896 = vmatpush.msrb.mxu3 %v889_v25 }
 0x118   :  { %v281_v29 = vpop.f32.mrf.mxu0 }
 0x119   :  { %v242_v26 = vpop.f32.mrf.mxu1 }
 0x11a   :  { %v245_v28 = vadd.f32 %v242_v26, %v206_v27  ;;  %v888_v26 = vld [vmem:[#allocation8 + $0x68] sm:$0xff]  ;;  %v887_v27 = vld [vmem:[#allocation8 + $0x60] sm:$0xff] }
 0x11b   :  { %897 = vmatpush.msrb.mxu3 %v888_v26 }
 0x11c   :  { %v284_v30 = vadd.f32 %v281_v29, %v245_v28  ;;  %v886_v28 = vld [vmem:[#allocation8 + $0x58] sm:$0xff]  ;;  %v885_v29 = vld [vmem:[#allocation8 + $0x50] sm:$0xff] }
 0x11d   :  { %898 = vmatpush.msrb.mxu3 %v887_v27 }
 0x11f   :  { %899 = vmatpush.msrb.mxu3 %v886_v28 }
 0x120   :  { %v398_v36 = vpop.f32.mrf.mxu3 }
 0x121   :  { %v320_v31 = vpop.f32.mrf.mxu1  ;;  %v515_v48 = vpop.f32.mrf.mxu2  ;;  %900 = vmatpush.msrb.mxu3 %v885_v29 }
 0x122   :  { %v323_v33 = vadd.f32 %v320_v31, %v284_v30  ;;  %v884_v30 = vld [vmem:[#allocation8 + $0x48] sm:$0xff]  ;;  %v883_v31 = vld [vmem:[#allocation8 + $0x40] sm:$0xff] }
 0x123   :  { %v437_v39 = vpop.f32.mrf.mxu0  ;;  %901 = vmatpush.msrb.mxu3 %v884_v30 }
 0x124   :  { %v362_v35 = vadd.f32 %v359_v40, %v323_v33  ;;  %v881_v33 = vld [vmem:[#allocation8 + $0x30] sm:$0xff]  ;;  %v880_v40 = vld [vmem:[#allocation8 + $0x28] sm:$0xff] }
 0x125   :  { %902 = vmatpush.msrb.mxu3 %v883_v31 }
 0x126   :  { %v401_v37 = vadd.f32 %v398_v36, %v362_v35  ;;  %v878_v35 = vld [vmem:[#allocation8 + $0x18] sm:$0xff]  ;;  %v876_v36 = vld [vmem:[#allocation8 + $0x8] sm:$0xff] }
 0x127   :  { %903 = vmatpush.msrb.mxu3 %v882_v32 }
 0x128   :  { %v440_v42 = vadd.f32 %v437_v39, %v401_v37  ;;  %v554_v51 = vpop.f32.mrf.mxu3  ;;  %v875_v37 = vld [vmem:[#allocation8] sm:$0xff] }
 0x129   :  { %904 = vmatpush.msrb.mxu3 %v881_v33 }
 0x12a   :  { %v671_v62 = vpop.f32.mrf.mxu2 }
 0x12b   :  { %v476_v45 = vpop.f32.mrf.mxu1  ;;  %905 = vmatpush.msrb.mxu3 %v880_v40 }
 0x12c   :  { %v479_v46 = vadd.f32 %v476_v45, %v440_v42  ;;  %v593_v52 = vpop.f32.mrf.mxu0 }
 0x12d   :  { %906 = vmatpush.msrb.mxu3 %v879_v34 }
 0x12e   :  { %v518_v49 = vadd.f32 %v515_v48, %v479_v46 }
 0x12f   :  { %907 = vmatpush.msrb.mxu3 %v878_v35 }
 0x130   :  { %v557_v54 = vadd.f32 %v554_v51, %v518_v49 }
 0x131   :  { %908 = vmatpush.msrb.mxu3 %v877_v43 }
 0x132   :  { %v596_v56 = vadd.f32 %v593_v52, %v557_v54 }
 0x133   :  { %v632_v58 = vpop.f32.mrf.mxu1  ;;  %909 = vmatpush.msrb.mxu3 %v876_v36 }
 0x134   :  { %v635_v60 = vadd.f32 %v632_v58, %v596_v56  ;;  %v1058_v56 = vld [vmem:[%s1395_s6] ss:$0 sm:$0xff]  ;;  %s942_s6 = sshll.u32 %s1396_s7, 4  ;;  %s943_s6 = int_to_ptr.hbm [resolvable:$true] %s942_s6 }
 0x135   :  { %910 = vmatpush.msrb.mxu3 %v875_v37 }
 0x136   :  { %v674_v0 = vadd.f32 %v671_v62, %v635_v60 }
 0x13a   :  { %v710_v1 = vpop.f32.mrf.mxu3 }
 0x13b   :  { %v713_v3 = vadd.f32 %v710_v1, %v674_v0  ;;  %v788_v6 = vpop.f32.mrf.mxu1 }
 0x13d   :  { %v749_v5 = vpop.f32.mrf.mxu0 }
 0x13e   :  { %v752_v7 = vadd.f32 %v749_v5, %v713_v3 }
 0x140   :  { %v791_v9 = vadd.f32 %v788_v6, %v752_v7 }
 0x142   :  { %v796_v10 = vadd.f32 %v1056_v8, %v791_v9 }
 0x144   :  { %v1008_v11 = vmul.f32 -1.442695, %v796_v10 }
 0x146   :  { %1059 = vpow2.f32 %v1008_v11 }
 0x14c   :  { %v1060_v12 = vpop.eup %1059 }
 0x14d   :  { %v800_v13 = vadd.f32 1.0, %v1060_v12 }
 0x14f   :  { %1061 = vrcp.f32 %v800_v13  ;;  %v812_v17 = vand.u32 2147483648, %v800_v13  ;;  %v810_v19 = vand.u32 2147483647, %v800_v13  ;;  %vm806_vm5 = vweird.f32 %v800_v13 }
 0x151   :  { %v813_v21 = vor.u32 1.1754944e-38, %v812_v17  ;;  %vm811_vm7 = vcmp.eq.f32.partialorder %v810_v19, 8.507059e+37 }
 0x155   :  { %v1062_v14 = vpop.eup %1061 }
 0x156   :  { %v802_v15 = vmul.f32 %v1062_v14, %v800_v13  ;;  %vm807_vm2 = vweird.f32 %v1062_v14 }
 0x157   :  { %vm808_vm6 = vmor %vm806_vm5, %vm807_vm2 }
 0x158   :  { %v803_v16 = vsub.f32 1.0, %v802_v15 }
 0x15a   :  { %v804_v18 = vmul.f32 %v1062_v14, %v803_v16 }
 0x15c   :  { %v805_v20 = vadd.f32 %v1062_v14, %v804_v18 }
 0x15e   :  { %v809_v22 = vsel %vm808_vm6, %v1062_v14, %v805_v20 }
 0x15f   :  { %v814_v23 = vsel %vm811_vm7, %v813_v21, %v809_v22 }
 0x160   :  { %852 = vmatmul.f32.vlgmr.msrb.gmra.mxu2 %v814_v23 }
 0x1e3   :  { %v853_v39 = vpop.f32.mrf.mxu2 }
 0x1e4   :  { %v854_v41 = vadd.f32 %v1057_v38, %v853_v39 }
 0x1e6   :  { %v1009_v42 = vmul.f32 -1.442695, %v854_v41 }
 0x1e8   :  { %1063 = vpow2.f32 %v1009_v42 }
 0x1ee   :  { %v1064_v44 = vpop.eup %1063 }
 0x1ef   :  { %v859_v45 = vadd.f32 1.0, %v1064_v44 }
 0x1f1   :  { %1065 = vrcp.f32 %v859_v45  ;;  %v871_v49 = vand.u32 2147483648, %v859_v45  ;;  %v869_v51 = vand.u32 2147483647, %v859_v45  ;;  %vm865_vm9 = vweird.f32 %v859_v45 }
 0x1f3   :  { %v872_v53 = vor.u32 1.1754944e-38, %v871_v49  ;;  %vm870_vm11 = vcmp.eq.f32.partialorder %v869_v51, 8.507059e+37 }
 0x1f7   :  { %v1066_v46 = vpop.eup %1065 }
 0x1f8   :  { %v861_v47 = vmul.f32 %v1066_v46, %v859_v45  ;;  %vm866_vm8 = vweird.f32 %v1066_v46 }
 0x1f9   :  { %vm867_vm10 = vmor %vm865_vm9, %vm866_vm8 }
 0x1fa   :  { %v862_v48 = vsub.f32 1.0, %v861_v47 }
 0x1fc   :  { %v863_v50 = vmul.f32 %v1066_v46, %v862_v48 }
 0x1fe   :  { %v864_v52 = vadd.f32 %v1066_v46, %v863_v50 }
 0x200   :  { %v868_v54 = vsel %vm867_vm10, %v1066_v46, %v864_v52 }
 0x201   :  { %v873_v55 = vsel %vm870_vm11, %v872_v53, %v868_v54 }
 0x202   :  { %911 = vmatmul.f32.vlgmr.msrb.gmra.mxu3 %v873_v55 }
 0x285   :  { %v912_v57 = vpop.f32.mrf.mxu3 }
 0x286   :  { %v913_v58 = vadd.f32 %v1058_v56, %v912_v57 }
 0x288   :  { %v1010_v59 = vmul.f32 -1.442695, %v913_v58 }
 0x28a   :  { %1067 = vpow2.f32 %v1010_v59 }
 0x290   :  { %v1068_v60 = vpop.eup %1067 }
 0x291   :  { %v918_v61 = vadd.f32 1.0, %v1068_v60 }
 0x293   :  { %1069 = vrcp.f32 %v918_v61  ;;  %v930_v1 = vand.u32 2147483648, %v918_v61  ;;  %v928_v3 = vand.u32 2147483647, %v918_v61  ;;  %vm924_vm13 = vweird.f32 %v918_v61 }
 0x295   :  { %v931_v5 = vor.u32 1.1754944e-38, %v930_v1  ;;  %vm929_vm15 = vcmp.eq.f32.partialorder %v928_v3, 8.507059e+37 }
 0x299   :  { %v1070_v62 = vpop.eup %1069 }
 0x29a   :  { %v920_v63 = vmul.f32 %v1070_v62, %v918_v61  ;;  %vm925_vm12 = vweird.f32 %v1070_v62 }
 0x29b   :  { %vm926_vm14 = vmor %vm924_vm13, %vm925_vm12 }
 0x29c   :  { %v921_v0 = vsub.f32 1.0, %v920_v63 }
 0x29e   :  { %v922_v2 = vmul.f32 %v1070_v62, %v921_v0 }
 0x2a0   :  { %v923_v4 = vadd.f32 %v1070_v62, %v922_v2 }
 0x2a2   :  { %v927_v6 = vsel %vm926_vm14, %v1070_v62, %v923_v4 }
 0x2a3   :  { %v932_v7 = vsel %vm929_vm15, %v931_v5, %v927_v6 }
 0x2a4   :  { %934 = vst [vmem:[#allocation10] sm:$0xff] %v932_v7 }
 0x2a5   :  { %945 = dma.vmem_to_hbm [thread:$0]  %s941_s24, 128, %s943_s6, [#allocation4]  }
 0x2a6   :  { %1197 = dma.done.wait [#allocation4], 128  }
 0x2a7   :  { %1198 = vsyncadd [#allocation4], 4294967168 }
 0x2a8   :  { %950 = vsyncpa [#allocation3], 1 }
 0x2a9   :  { %951 = vsyncpa [#allocation6], 1 }
 0x2aa   :  { %952 = vsyncpa [#allocation9], 1 }
 0x2ab   :  { %953 = vsyncpa [#allocation4], 1 }

</bundles_post_ra>
